<compile_context>
chip_gen: v7x
topology: tpu7x:2x2x1
jax: 0.10.0
libtpu: 0.0.40
codegen_flags: <defaults>
</compile_context>

<pallas_src>
import functools

import jax
import jax.numpy as jnp
from jax.experimental import pallas as pl
from jax.experimental.pallas import tpu as pltpu


# ---------------------------------------------------------------------------
# Fused kernel: CNN trunk (conv1 + conv2 + pool) + FC head accumulation.
# ---------------------------------------------------------------------------
def model_kernel(xt_ref, w1_ref, b1_ref, w2_ref, b2_ref,
                 wf1_ref, bf1_ref, wf2_ref, bf2_ref,
                 out_ref, fc1_acc,
                 *, seq_len, seq_pad, c1):
    # xt_ref:  (spb*seq_pad, 3*cin)  conv1 tap slab [x[l-1], x[l], x[l+1]]
    # w1_ref:  (3*cin, 32)           conv1 weight, taps stacked on K
    # b1_ref:  (1, 32)
    # w2_ref:  (3*32, 64)            conv2 weight, taps stacked on K
    # b2_ref:  (1, 64)
    # wf1_ref: (1, 64, 128)          fc1 weight slice for THIS timeframe
    # bf1_ref: (1, 128)
    # wf2_ref: (128, 128)            fc2 weight, output cols padded 3 -> 128
    # bf2_ref: (1, 128)
    # out_ref: (spb, 128)            lane-dense logits slab (first 3 cols valid)
    # fc1_acc: (spb, 128) VMEM       fc1 pre-activation, accumulated over timeframes
    t = pl.program_id(1)
    rows = xt_ref.shape[0]                      # spb * seq_pad (static)
    spb = rows // seq_pad
    pos = jax.lax.broadcasted_iota(jnp.int32, (rows, 1), 0) % seq_pad

    # Conv1d(5->32, k=3, pad=1) + ReLU: taps prebuilt in the wrapper -> one matmul.
    h1 = jnp.dot(xt_ref[...], w1_ref[...], preferred_element_type=jnp.float32)
    h1 = jnp.maximum(h1 + b1_ref[...], 0.0)                       # (rows, 32)

    # Conv1d(32->64, k=3, pad=1) + ReLU: shifted copies of h1 via pltpu.roll
    # (non-negative shifts), masked at sequence boundaries; three accumulating
    # dots against static slices of the tap-stacked weight (no lane concat).
    prev = jnp.where(pos > 0, pltpu.roll(h1, 1, axis=0), 0.0)
    nxt = jnp.where(pos < seq_len - 1, pltpu.roll(h1, rows - 1, axis=0), 0.0)
    w2 = w2_ref[...]
    h2 = (jnp.dot(prev, w2[0 * c1:1 * c1], preferred_element_type=jnp.float32)
          + jnp.dot(h1, w2[1 * c1:2 * c1], preferred_element_type=jnp.float32)
          + jnp.dot(nxt, w2[2 * c1:3 * c1], preferred_element_type=jnp.float32))
    h2 = jnp.maximum(h2 + b2_ref[...], 0.0)                       # (rows, 64)

    # AdaptiveAvgPool1d(1): in-kernel segment mean (no dense pooling matrix).
    if seq_pad != seq_len:                      # mask rows added only by padding
        h2 = jnp.where(pos < seq_len, h2, 0.0)
    pooled = h2.reshape(spb, seq_pad, h2.shape[-1]).sum(axis=1) * (1.0 / seq_len)

    # fc1 (192 -> 128) accumulated per timeframe (matches torch.cat order).
    @pl.when(t == 0)
    def _init():
        fc1_acc[...] = jnp.zeros_like(fc1_acc)

    fc1_acc[...] += jnp.dot(pooled, wf1_ref[0], preferred_element_type=jnp.float32)

    # ReLU -> Dropout(0.2) (identity at inference) -> fc2 (128 -> 3, padded cols).
    # TODO(synk): add stochastic dropout via pltpu.prng_* for training parity.
    @pl.when(t == pl.num_programs(1) - 1)
    def _finalize():
        h = jnp.maximum(fc1_acc[...] + bf1_ref[...], 0.0)
        out_ref[...] = (jnp.dot(h, wf2_ref[...], preferred_element_type=jnp.float32)
                        + bf2_ref[...])


# ---------------------------------------------------------------------------
# Wrapper
# ---------------------------------------------------------------------------
def _segments_per_block(bsz, seq_pad, max_rows=2048):
    """Whole sequences per grid block; must divide bsz with (8,128)-clean tiles."""
    if bsz * seq_pad <= max_rows:
        return bsz
    for d in range(bsz, 0, -1):
        if bsz % d == 0 and d % 8 == 0 and d * seq_pad <= max_rows:
            return d
    # TODO(synk): pad bsz up to a multiple of 8 if no clean divisor exists.
    return bsz


def multi_tf_pattern_cnn(params, x1h, x4h, x1d):
    bsz, seq_len, cin = x1h.shape
    seq_pad = ((seq_len + 7) // 8) * 8
    c1 = params["w_c1"].shape[-1]               # 32
    c2 = params["w_c2"].shape[-1]               # 64
    nf = params["w_f1"].shape[-1]               # 128

    # Timeframe-major stack: row = ((t*B + b) * seq_pad + l).
    xs = jnp.stack([x1h, x4h, x1d], axis=0)                       # (3, B, L, 5)
    if seq_pad != seq_len:
        xs = jnp.pad(xs, ((0, 0), (0, 0), (0, seq_pad - seq_len), (0, 0)))

    # Hoist conv1's k=3 shifts out of the kernel (free XLA work on an HBM input):
    # tap slab [x[l-1], x[l], x[l+1]] per row, zero-padded at sequence edges.
    zero = jnp.zeros_like(xs[:, :, :1])
    prev = jnp.concatenate([zero, xs[:, :, :-1]], axis=2)
    nxt = jnp.concatenate([xs[:, :, 1:], zero], axis=2)
    taps = jnp.concatenate([prev, xs, nxt], axis=-1)              # (3, B, Lp, 15)
    taps = taps.reshape(3 * bsz * seq_pad, 3 * cin)

    # Tap-stacked conv weights; fc1 split per timeframe; fc2 output cols padded
    # to 128 lanes for a lane-dense final store.
    # TODO(synk): optionally cast weights / MXU operands to bf16 on v6e/v7x.
    w1 = params["w_c1"].reshape(3 * cin, c1)
    w2 = params["w_c2"].reshape(3 * c1, c2)
    wf1 = params["w_f1"].reshape(3, c2, nf)
    n_out = params["w_f2"].shape[1]
    pad_cols = nf - n_out
    wf2 = jnp.pad(params["w_f2"], ((0, 0), (0, pad_cols)))
    bf2 = jnp.pad(params["b_f2"], ((0, 0), (0, pad_cols)))

    spb = _segments_per_block(bsz, seq_pad)
    nbb = bsz // spb
    blk_rows = spb * seq_pad

    n_rows = 3 * bsz * seq_pad
    flops = (2 * n_rows * (3 * cin * c1 + 3 * c1 * c2)
             + 2 * 3 * bsz * c2 * nf + 2 * bsz * nf * nf)
    bytes_accessed = 4 * (taps.size + w1.size + w2.size + wf1.size + wf2.size
                          + params["b_c1"].size + params["b_c2"].size
                          + params["b_f1"].size + bf2.size + bsz * nf)

    wconst = lambda bb, t: (0, 0)
    out = pl.pallas_call(
        functools.partial(model_kernel, seq_len=seq_len, seq_pad=seq_pad, c1=c1),
        out_shape=jax.ShapeDtypeStruct((bsz, nf), jnp.float32),
        grid_spec=pltpu.PrefetchScalarGridSpec(
            num_scalar_prefetch=0,
            grid=(nbb, 3),
            in_specs=[
                pl.BlockSpec((blk_rows, 3 * cin), lambda bb, t: (t * nbb + bb, 0)),
                pl.BlockSpec((3 * cin, c1), wconst),
                pl.BlockSpec((1, c1), wconst),
                pl.BlockSpec((3 * c1, c2), wconst),
                pl.BlockSpec((1, c2), wconst),
                pl.BlockSpec((1, c2, nf), lambda bb, t: (t, 0, 0)),
                pl.BlockSpec((1, nf), wconst),
                pl.BlockSpec((nf, nf), wconst),
                pl.BlockSpec((1, nf), wconst),
            ],
            out_specs=pl.BlockSpec((spb, nf), lambda bb, t: (bb, 0)),
            scratch_shapes=[pltpu.VMEM((spb, nf), jnp.float32)],
        ),
        compiler_params=pltpu.CompilerParams(
            dimension_semantics=("parallel", "arbitrary"),
            vmem_limit_bytes=32 * 1024 * 1024),
        cost_estimate=pl.CostEstimate(flops=flops, transcendentals=0,
                                      bytes_accessed=bytes_accessed),
    )(taps, w1, params["b_c1"], w2, params["b_c2"],
      wf1, params["b_f1"], wf2, bf2)

    return out[:, :n_out]


# ---------------------------------------------------------------------------
# Pure-JAX reference (for correctness check)
# ---------------------------------------------------------------------------
def ref_forward(params, x1h, x4h, x1d):
    def cnn(x):
        seq_len = x.shape[1]
        xp = jnp.pad(x, ((0, 0), (1, 1), (0, 0)))
        h = sum(xp[:, k:k + seq_len, :] @ params["w_c1"][k] for k in range(3))
        h = jnp.maximum(h + params["b_c1"], 0.0)
        hp = jnp.pad(h, ((0, 0), (1, 1), (0, 0)))
        h2 = sum(hp[:, k:k + seq_len, :] @ params["w_c2"][k] for k in range(3))
        h2 = jnp.maximum(h2 + params["b_c2"], 0.0)
        return jnp.mean(h2, axis=1)

    f = jnp.concatenate([cnn(x1h), cnn(x4h), cnn(x1d)], axis=1)
    h = jnp.maximum(f @ params["w_f1"] + params["b_f1"], 0.0)
    return h @ params["w_f2"] + params["b_f2"]


if __name__ == "__main__":
    key = jax.random.PRNGKey(0)
    keys = jax.random.split(key, 11)
    B, L, CIN = 2, 8, 5

    # Conv weights stored as (tap, cin, cout) == transpose of PyTorch (cout, cin, tap).
    params = {
        "w_c1": 0.1 * jax.random.normal(keys[0], (3, CIN, 32), jnp.float32),
        "b_c1": 0.1 * jax.random.normal(keys[1], (1, 32), jnp.float32),
        "w_c2": 0.1 * jax.random.normal(keys[2], (3, 32, 64), jnp.float32),
        "b_c2": 0.1 * jax.random.normal(keys[3], (1, 64), jnp.float32),
        "w_f1": 0.1 * jax.random.normal(keys[4], (192, 128), jnp.float32),
        "b_f1": 0.1 * jax.random.normal(keys[5], (1, 128), jnp.float32),
        "w_f2": 0.1 * jax.random.normal(keys[6], (128, 3), jnp.float32),
        "b_f2": 0.1 * jax.random.normal(keys[7], (1, 3), jnp.float32),
    }

    x1h = jax.random.normal(keys[8], (B, L, CIN), jnp.float32)
    x4h = jax.random.normal(keys[9], (B, L, CIN), jnp.float32)
    x1d = jax.random.normal(keys[10], (B, L, CIN), jnp.float32)

    out = jax.jit(multi_tf_pattern_cnn)(params, x1h, x4h, x1d)
    out = jax.block_until_ready(out)

    ref = ref_forward(params, x1h, x4h, x1d)
    assert out.shape == (B, 3), out.shape
    assert jnp.allclose(out, ref, atol=1e-3, rtol=1e-3), (out, ref)
    print("KERNEL_OK")
</pallas_src>

<mosaic_0001>
module attributes {stable_mosaic.version = 11 : i64} {
  func.func @model_kernel(%arg0: i32, %arg1: i32, %arg2: memref<16x15xf32, #tpu.memory_space<vmem>>, %arg3: memref<15x32xf32, #tpu.memory_space<vmem>>, %arg4: memref<1x32xf32, #tpu.memory_space<vmem>>, %arg5: memref<96x64xf32, #tpu.memory_space<vmem>>, %arg6: memref<1x64xf32, #tpu.memory_space<vmem>>, %arg7: memref<1x64x128xf32, #tpu.memory_space<vmem>>, %arg8: memref<1x128xf32, #tpu.memory_space<vmem>>, %arg9: memref<128x128xf32, #tpu.memory_space<vmem>>, %arg10: memref<1x128xf32, #tpu.memory_space<vmem>>, %arg11: memref<2x128xf32, #tpu.memory_space<vmem>>, %arg12: memref<2x128xf32, #tpu.memory_space<vmem>>) attributes {dimension_semantics = [#tpu.dimension_semantics<parallel>, #tpu.dimension_semantics<arbitrary>], iteration_bounds = array<i64: 1, 3>, scalar_prefetch = 0 : i64, scratch_operands = 1 : i64, tpu.core_type = #tpu.core_type<tc>, window_params = [{transform_indices = @transform_0, window_bounds = array<i64: 16, 15>}, {pipeline_mode = #tpu.pipeline_mode<synchronous>, transform_indices = @transform_1, window_bounds = array<i64: 15, 32>}, {pipeline_mode = #tpu.pipeline_mode<synchronous>, transform_indices = @transform_2, window_bounds = array<i64: 1, 32>}, {pipeline_mode = #tpu.pipeline_mode<synchronous>, transform_indices = @transform_3, window_bounds = array<i64: 96, 64>}, {pipeline_mode = #tpu.pipeline_mode<synchronous>, transform_indices = @transform_4, window_bounds = array<i64: 1, 64>}, {transform_indices = @transform_5, window_bounds = array<i64: 1, 64, 128>}, {pipeline_mode = #tpu.pipeline_mode<synchronous>, transform_indices = @transform_6, window_bounds = array<i64: 1, 128>}, {pipeline_mode = #tpu.pipeline_mode<synchronous>, transform_indices = @transform_7, window_bounds = array<i64: 128, 128>}, {pipeline_mode = #tpu.pipeline_mode<synchronous>, transform_indices = @transform_8, window_bounds = array<i64: 1, 128>}, {transform_indices = @transform_9, window_bounds = array<i64: 2, 128>}]} {
    %0 = tpu.iota {dimensions = array<i32: 0>} : vector<16x1xi32>
    %c8_i32 = arith.constant 8 : i32
    %c0_i32 = arith.constant 0 : i32
    %1 = arith.cmpi eq, %c8_i32, %c0_i32 : i32
    %c1_i32 = arith.constant 1 : i32
    %2 = arith.select %1, %c1_i32, %c8_i32 : i32
    %3 = vector.broadcast %2 : i32 to vector<16x1xi32>
    %4 = arith.remsi %0, %3 : vector<16x1xi32>
    %c0_i32_0 = arith.constant 0 : i32
    %5 = vector.broadcast %c0_i32_0 : i32 to vector<16x1xi32>
    %6 = arith.cmpi ne, %4, %5 : vector<16x1xi32>
    %c0_i32_1 = arith.constant 0 : i32
    %7 = vector.broadcast %c0_i32_1 : i32 to vector<16x1xi32>
    %8 = arith.cmpi slt, %4, %7 : vector<16x1xi32>
    %c0_i32_2 = arith.constant 0 : i32
    %9 = arith.cmpi slt, %2, %c0_i32_2 : i32
    %10 = vector.broadcast %9 : i1 to vector<16x1xi1>
    %11 = vector.broadcast %10 : vector<16x1xi1> to vector<16x1xi1>
    %12 = arith.xori %8, %11 : vector<16x1xi1>
    %13 = arith.andi %12, %6 : vector<16x1xi1>
    %14 = vector.broadcast %2 : i32 to vector<16x1xi32>
    %15 = arith.addi %4, %14 : vector<16x1xi32>
    %16 = arith.select %13, %15, %4 : vector<16x1xi1>, vector<16x1xi32>
    %c0 = arith.constant 0 : index
    %c0_3 = arith.constant 0 : index
    %17 = vector.load %arg2[%c0, %c0_3] : memref<16x15xf32, #tpu.memory_space<vmem>>, vector<16x15xf32>
    %c0_4 = arith.constant 0 : index
    %c0_5 = arith.constant 0 : index
    %18 = vector.load %arg3[%c0_4, %c0_5] : memref<15x32xf32, #tpu.memory_space<vmem>>, vector<15x32xf32>
    %cst = arith.constant dense<0.000000e+00> : vector<16x32xf32>
    %19 = tpu.matmul %17, %18, %cst {dimension_numbers = #tpu.dot_dimension_numbers<[1], [0], [0], [1], [0, 0, 1, 1], [], []>} : vector<16x15xf32>, vector<15x32xf32>, vector<16x32xf32> -> vector<16x32xf32>
    %c0_6 = arith.constant 0 : index
    %c0_7 = arith.constant 0 : index
    %20 = vector.load %arg4[%c0_6, %c0_7] : memref<1x32xf32, #tpu.memory_space<vmem>>, vector<1x32xf32>
    %21 = vector.broadcast %20 : vector<1x32xf32> to vector<16x32xf32>
    %22 = arith.addf %19, %21 : vector<16x32xf32>
    %cst_8 = arith.constant 0.000000e+00 : f32
    %23 = vector.broadcast %cst_8 : f32 to vector<16x32xf32>
    %24 = arith.maximumf %22, %23 : vector<16x32xf32>
    %c0_i32_9 = arith.constant 0 : i32
    %25 = vector.broadcast %c0_i32_9 : i32 to vector<16x1xi32>
    %26 = arith.cmpi sgt, %16, %25 : vector<16x1xi32>
    %c1_i32_10 = arith.constant 1 : i32
    %27 = tpu.dynamic_rotate %24 by %c1_i32_10 dim 0 : vector<16x32xf32>, i32 -> vector<16x32xf32>
    %cst_11 = arith.constant 0.000000e+00 : f32
    %28 = vector.shape_cast %26 : vector<16x1xi1> to vector<16x1xi1>
    %29 = vector.broadcast %28 : vector<16x1xi1> to vector<16x32xi1>
    %30 = vector.broadcast %cst_11 : f32 to vector<16x32xf32>
    %31 = arith.select %29, %27, %30 : vector<16x32xi1>, vector<16x32xf32>
    %c7_i32 = arith.constant 7 : i32
    %32 = vector.broadcast %c7_i32 : i32 to vector<16x1xi32>
    %33 = arith.cmpi slt, %16, %32 : vector<16x1xi32>
    %c15_i32 = arith.constant 15 : i32
    %34 = tpu.dynamic_rotate %24 by %c15_i32 dim 0 : vector<16x32xf32>, i32 -> vector<16x32xf32>
    %cst_12 = arith.constant 0.000000e+00 : f32
    %35 = vector.shape_cast %33 : vector<16x1xi1> to vector<16x1xi1>
    %36 = vector.broadcast %35 : vector<16x1xi1> to vector<16x32xi1>
    %37 = vector.broadcast %cst_12 : f32 to vector<16x32xf32>
    %38 = arith.select %36, %34, %37 : vector<16x32xi1>, vector<16x32xf32>
    %c0_13 = arith.constant 0 : index
    %c0_14 = arith.constant 0 : index
    %39 = vector.load %arg5[%c0_13, %c0_14] : memref<96x64xf32, #tpu.memory_space<vmem>>, vector<96x64xf32>
    %40 = vector.extract_strided_slice %39 {offsets = [0, 0], sizes = [32, 64], strides = [1, 1]} : vector<96x64xf32> to vector<32x64xf32>
    %cst_15 = arith.constant dense<0.000000e+00> : vector<16x64xf32>
    %41 = tpu.matmul %31, %40, %cst_15 {dimension_numbers = #tpu.dot_dimension_numbers<[1], [0], [0], [1], [0, 0, 1, 1], [], []>} : vector<16x32xf32>, vector<32x64xf32>, vector<16x64xf32> -> vector<16x64xf32>
    %42 = vector.extract_strided_slice %39 {offsets = [32, 0], sizes = [32, 64], strides = [1, 1]} : vector<96x64xf32> to vector<32x64xf32>
    %cst_16 = arith.constant dense<0.000000e+00> : vector<16x64xf32>
    %43 = tpu.matmul %24, %42, %cst_16 {dimension_numbers = #tpu.dot_dimension_numbers<[1], [0], [0], [1], [0, 0, 1, 1], [], []>} : vector<16x32xf32>, vector<32x64xf32>, vector<16x64xf32> -> vector<16x64xf32>
    %44 = arith.addf %41, %43 : vector<16x64xf32>
    %45 = vector.extract_strided_slice %39 {offsets = [64, 0], sizes = [32, 64], strides = [1, 1]} : vector<96x64xf32> to vector<32x64xf32>
    %cst_17 = arith.constant dense<0.000000e+00> : vector<16x64xf32>
    %46 = tpu.matmul %38, %45, %cst_17 {dimension_numbers = #tpu.dot_dimension_numbers<[1], [0], [0], [1], [0, 0, 1, 1], [], []>} : vector<16x32xf32>, vector<32x64xf32>, vector<16x64xf32> -> vector<16x64xf32>
    %47 = arith.addf %44, %46 : vector<16x64xf32>
    %c0_18 = arith.constant 0 : index
    %c0_19 = arith.constant 0 : index
    %48 = vector.load %arg6[%c0_18, %c0_19] : memref<1x64xf32, #tpu.memory_space<vmem>>, vector<1x64xf32>
    %49 = vector.broadcast %48 : vector<1x64xf32> to vector<16x64xf32>
    %50 = arith.addf %47, %49 : vector<16x64xf32>
    %cst_20 = arith.constant 0.000000e+00 : f32
    %51 = vector.broadcast %cst_20 : f32 to vector<16x64xf32>
    %52 = arith.maximumf %50, %51 : vector<16x64xf32>
    %53 = vector.shape_cast %52 : vector<16x64xf32> to vector<2x8x64xf32>
    %cst_21 = arith.constant dense<0.000000e+00> : vector<2x64xf32>
    %54 = vector.multi_reduction <add>, %53, %cst_21 [1] : vector<2x8x64xf32> to vector<2x64xf32>
    %cst_22 = arith.constant 1.250000e-01 : f32
    %55 = vector.broadcast %cst_22 : f32 to vector<2x64xf32>
    %56 = arith.mulf %54, %55 : vector<2x64xf32>
    %c0_i32_23 = arith.constant 0 : i32
    %57 = arith.cmpi eq, %arg1, %c0_i32_23 : i32
    %58 = arith.extui %57 : i1 to i32
    %c0_i32_24 = arith.constant 0 : i32
    %59 = arith.cmpi ne, %58, %c0_i32_24 : i32
    scf.if %59 {
      %cst_34 = arith.constant 0.000000e+00 : f32
      %69 = vector.broadcast %cst_34 : f32 to vector<2x128xf32>
      %c0_35 = arith.constant 0 : index
      %c0_36 = arith.constant 0 : index
      %70 = vector.load %arg12[%c0_35, %c0_36] : memref<2x128xf32, #tpu.memory_space<vmem>>, vector<2x128xf32>
      tpu.vector_store %arg12[%c0_35, %c0_36], %69 {strides = array<i32>} : memref<2x128xf32, #tpu.memory_space<vmem>>, vector<2x128xf32>,
    } else {
    }
    %c0_25 = arith.constant 0 : index
    %c0_26 = arith.constant 0 : index
    %60 = vector.load %arg12[%c0_25, %c0_26] : memref<2x128xf32, #tpu.memory_space<vmem>>, vector<2x128xf32>
    %c0_27 = arith.constant 0 : index
    %c0_28 = arith.constant 0 : index
    %c0_29 = arith.constant 0 : index
    %61 = vector.load %arg7[%c0_27, %c0_28, %c0_29] : memref<1x64x128xf32, #tpu.memory_space<vmem>>, vector<1x64x128xf32>
    %62 = vector.shape_cast %61 : vector<1x64x128xf32> to vector<64x128xf32>
    %cst_30 = arith.constant dense<0.000000e+00> : vector<2x128xf32>
    %63 = tpu.matmul %56, %62, %cst_30 {dimension_numbers = #tpu.dot_dimension_numbers<[1], [0], [0], [1], [0, 0, 1, 1], [], []>} : vector<2x64xf32>, vector<64x128xf32>, vector<2x128xf32> -> vector<2x128xf32>
    %64 = arith.addf %60, %63 : vector<2x128xf32>
    %c0_31 = arith.constant 0 : index
    %c0_32 = arith.constant 0 : index
    %65 = vector.load %arg12[%c0_31, %c0_32] : memref<2x128xf32, #tpu.memory_space<vmem>>, vector<2x128xf32>
    tpu.vector_store %arg12[%c0_31, %c0_32], %64 {strides = array<i32>} : memref<2x128xf32, #tpu.memory_space<vmem>>, vector<2x128xf32>,
    %c2_i32 = arith.constant 2 : i32
    %66 = arith.cmpi eq, %arg1, %c2_i32 : i32
    %67 = arith.extui %66 : i1 to i32
    %c0_i32_33 = arith.constant 0 : i32
    %68 = arith.cmpi ne, %67, %c0_i32_33 : i32
    scf.if %68 {
      %c0_34 = arith.constant 0 : index
      %c0_35 = arith.constant 0 : index
      %69 = vector.load %arg12[%c0_34, %c0_35] : memref<2x128xf32, #tpu.memory_space<vmem>>, vector<2x128xf32>
      %c0_36 = arith.constant 0 : index
      %c0_37 = arith.constant 0 : index
      %70 = vector.load %arg8[%c0_36, %c0_37] : memref<1x128xf32, #tpu.memory_space<vmem>>, vector<1x128xf32>
      %71 = vector.broadcast %70 : vector<1x128xf32> to vector<2x128xf32>
      %72 = arith.addf %69, %71 : vector<2x128xf32>
      %cst_38 = arith.constant 0.000000e+00 : f32
      %73 = vector.broadcast %cst_38 : f32 to vector<2x128xf32>
      %74 = arith.maximumf %72, %73 : vector<2x128xf32>
      %c0_39 = arith.constant 0 : index
      %c0_40 = arith.constant 0 : index
      %75 = vector.load %arg9[%c0_39, %c0_40] : memref<128x128xf32, #tpu.memory_space<vmem>>, vector<128x128xf32>
      %cst_41 = arith.constant dense<0.000000e+00> : vector<2x128xf32>
      %76 = tpu.matmul %74, %75, %cst_41 {dimension_numbers = #tpu.dot_dimension_numbers<[1], [0], [0], [1], [0, 0, 1, 1], [], []>} : vector<2x128xf32>, vector<128x128xf32>, vector<2x128xf32> -> vector<2x128xf32>
      %c0_42 = arith.constant 0 : index
      %c0_43 = arith.constant 0 : index
      %77 = vector.load %arg10[%c0_42, %c0_43] : memref<1x128xf32, #tpu.memory_space<vmem>>, vector<1x128xf32>
      %78 = vector.broadcast %77 : vector<1x128xf32> to vector<2x128xf32>
      %79 = arith.addf %76, %78 : vector<2x128xf32>
      %c0_44 = arith.constant 0 : index
      %c0_45 = arith.constant 0 : index
      %80 = vector.load %arg11[%c0_44, %c0_45] : memref<2x128xf32, #tpu.memory_space<vmem>>, vector<2x128xf32>
      tpu.vector_store %arg11[%c0_44, %c0_45], %79 {strides = array<i32>} : memref<2x128xf32, #tpu.memory_space<vmem>>, vector<2x128xf32>,
    } else {
    }
    return
  }
  func.func @transform_0(%arg0: i32, %arg1: i32) -> (i32, i32) {
    %c1_i32 = arith.constant 1 : i32
    %0 = arith.muli %arg1, %c1_i32 : i32
    %1 = arith.addi %0, %arg0 : i32
    %c0_i32 = arith.constant 0 : i32
    %c0_i32_0 = arith.constant 0 : i32
    return %1, %c0_i32 : i32, i32
  }
  func.func @transform_1(%arg0: i32, %arg1: i32) -> (i32, i32) {
    %c0_i32 = arith.constant 0 : i32
    %c0_i32_0 = arith.constant 0 : i32
    %c0_i32_1 = arith.constant 0 : i32
    return %c0_i32, %c0_i32_0 : i32, i32
  }
  func.func @transform_2(%arg0: i32, %arg1: i32) -> (i32, i32) {
    %c0_i32 = arith.constant 0 : i32
    %c0_i32_0 = arith.constant 0 : i32
    %c0_i32_1 = arith.constant 0 : i32
    return %c0_i32, %c0_i32_0 : i32, i32
  }
  func.func @transform_3(%arg0: i32, %arg1: i32) -> (i32, i32) {
    %c0_i32 = arith.constant 0 : i32
    %c0_i32_0 = arith.constant 0 : i32
    %c0_i32_1 = arith.constant 0 : i32
    return %c0_i32, %c0_i32_0 : i32, i32
  }
  func.func @transform_4(%arg0: i32, %arg1: i32) -> (i32, i32) {
    %c0_i32 = arith.constant 0 : i32
    %c0_i32_0 = arith.constant 0 : i32
    %c0_i32_1 = arith.constant 0 : i32
    return %c0_i32, %c0_i32_0 : i32, i32
  }
  func.func @transform_5(%arg0: i32, %arg1: i32) -> (i32, i32, i32) {
    %c0_i32 = arith.constant 0 : i32
    %c0_i32_0 = arith.constant 0 : i32
    %c0_i32_1 = arith.constant 0 : i32
    return %arg1, %c0_i32, %c0_i32_0 : i32, i32, i32
  }
  func.func @transform_6(%arg0: i32, %arg1: i32) -> (i32, i32) {
    %c0_i32 = arith.constant 0 : i32
    %c0_i32_0 = arith.constant 0 : i32
    %c0_i32_1 = arith.constant 0 : i32
    return %c0_i32, %c0_i32_0 : i32, i32
  }
  func.func @transform_7(%arg0: i32, %arg1: i32) -> (i32, i32) {
    %c0_i32 = arith.constant 0 : i32
    %c0_i32_0 = arith.constant 0 : i32
    %c0_i32_1 = arith.constant 0 : i32
    return %c0_i32, %c0_i32_0 : i32, i32
  }
  func.func @transform_8(%arg0: i32, %arg1: i32) -> (i32, i32) {
    %c0_i32 = arith.constant 0 : i32
    %c0_i32_0 = arith.constant 0 : i32
    %c0_i32_1 = arith.constant 0 : i32
    return %c0_i32, %c0_i32_0 : i32, i32
  }
  func.func @transform_9(%arg0: i32, %arg1: i32) -> (i32, i32) {
    %c0_i32 = arith.constant 0 : i32
    %c0_i32_0 = arith.constant 0 : i32
    return %arg0, %c0_i32 : i32, i32
  }
}

</mosaic_0001>

<bundles_post_ra>
// kernel: multi_tf_pattern_cnn.1
= control target key start
LH: loop header
LB: loop body
LE: loop exit
PB: predicated region body
PF: predicated region fallthrough
CT: control target
= control target key end

     0   :  { %14 = vsyncpa [#allocation4], 0  ;;  %s1467_s30 = smov 0   ;;  %s1469_s10 = smov 0   ;;  %s1657_s0 = inlined_call_operand.vmem [shape: f32[48,15], index: 0, kind: input, shape index: {}]   ;;  %s1658_s1 = inlined_call_operand.vmem [shape: f32[15,32], index: 1, kind: input, shape index: {}]   ;;  %s1659_s2 = inlined_call_operand.vmem [shape: f32[1,32], index: 2, kind: input, shape index: {}]   ;;  %s1660_s3 = inlined_call_operand.vmem [shape: f32[96,64], index: 3, kind: input, shape index: {}]   ;;  %s1661_s4 = inlined_call_operand.vmem [shape: f32[1,64], index: 4, kind: input, shape index: {}]   ;;  %s1662_s5 = inlined_call_operand.vmem [shape: f32[3,64,128], index: 5, kind: input, shape index: {}]   ;;  %s1663_s6 = inlined_call_operand.vmem [shape: f32[1,128], index: 6, kind: input, shape index: {}]   ;;  %s1664_s7 = inlined_call_operand.vmem [shape: f32[128,128], index: 7, kind: input, shape index: {}]   ;;  %s1665_s8 = inlined_call_operand.vmem [shape: f32[1,128], index: 8, kind: input, shape index: {}]   ;;  %s1666_s9 = inlined_call_operand.hbm [shape: f32[2,128], index: 9, kind: output, shape index: {}]  }
   0x1   :  { %s1471_s11 = smov 0  }
   0x2 LB: > { %s1074_s12 = sadd.s32 4294967295, %s1406_s11   ;;  %s29_s13 = sadd.s32 1, %s1402_s10  ;;  %s1406_s11 = sphi %s1471_s11, %s20_s11   ;;  %s1402_s10 = sphi %s1469_s10, %s1669_s10   ;;  %s1398_s30 = sphi %s1467_s30, %s1668_s30  }
   0x3   : > { %p30_p0 = scmp.ge.s32.totalorder %s29_s13, 3  ;;  %p1077_p1 = scmp.ge.s32.totalorder %s1406_s11, 1 }
   0x4   : > { %p315_p2 = scmp.lt.s32.totalorder %s1406_s11, 4 }
   0x5   : > { %s1671_s13 = smov (%p30_p0, %s29_s13), 0 }
   0x6   : > { %p316_p3 = pnand %p1077_p1, %p315_p2 }
   0x7   : > { %p360_p4 = scmp.lt.s32.totalorder (!%p316_p3), %s1398_s30, 2  ;;  %v394_v0 = vld [vmem:[%s1658_s1] sm:$0xff] (!%p316_p3)  ;;  %v395_v1 = vld [vmem:[%s1658_s1 + $0x8] sm:$0x7f] (!%p316_p3)  ;;  %vm410_vm0 = vcmask (!%p316_p3), 1046528   ;;  %vm1408_vm1 = vmmov (!%p316_p3), 1   ;;  %v365_v14 = vlaneseq (!%p316_p3) }
   0x8   : > { %319 = sbr.rel (%p316_p3) target bundleno = 970 (0x3ca), region = 56  ;;  %v1245_v2 = vpack.c.bf16 (!%p316_p3), %v395_v1, %v394_v0  ;;  %vm1246_vm2 = vmpackc.low (!%p316_p3), %vm410_vm0, %vm1408_vm1  ;;  %s1078_s18 = sshll.u32 (!%p316_p3), %s1398_s30, 1  ;;  %v521_v3 = vld [vmem:[%s1660_s3 + $0x20] sm:$0xff] (!%p316_p3)  ;;  %v522_v4 = vld [vmem:[%s1660_s3 + $0x28] sm:$0xff] (!%p316_p3)  ;;  %vm403_vm3 = vcmask (!%p316_p3), 121856   ;;  %vm529_vm4 = vcmask (!%p316_p3), 261120  }
   0x9   : > { %v1251_v5 = vpack.c.bf16 (!%p316_p3), %v522_v4, %v521_v3  ;;  %p354_p5 = scmp.lt.s32.totalorder (!%p316_p3), %s1078_s18, 5  ;;  %v523_v8 = vld [vmem:[%s1660_s3 + $0x30] sm:$0xff] (!%p316_p3)  ;;  %v524_v9 = vld [vmem:[%s1660_s3 + $0x38] sm:$0xff] (!%p316_p3)  ;;  %v517_v11 = vld [vmem:[%s1660_s3] sm:$0xff] (!%p316_p3)  ;;  %v366_v16 = vshrl.u32 (!%p316_p3), %v365_v14, 7  ;;  %vm786_vm11 = vcmask (!%p316_p3), 523264  }
   0xa   : > { %1247 = vmatprep.subr.msk.bf16.mxu0 (!%p316_p3), %vm1246_vm2, %v1245_v2  ;;  %v1255_v10 = vpack.c.bf16 (!%p316_p3), %v524_v9, %v523_v8  ;;  %v518_v12 = vld [vmem:[%s1660_s3 + $0x8] sm:$0xff] (!%p316_p3)  ;;  %v1082_v15 = vld [vmem:[%s1659_s2] ss:$0 sm:$0xff] (!%p316_p3)  ;;  %v519_v21 = vld [vmem:[%s1660_s3 + $0x10] sm:$0xff] (!%p316_p3)  ;;  %p1093_p6 = scmp.ne.s32.totalorder (!%p316_p3), %s1398_s30, 0 }
   0xb   : > { %1250 = vmatpush3.bf16.msk.msra.mxu0 (!%p316_p3), %vm1246_vm2, %v1245_v2  ;;  %1252 = vmatprep.subr.bf16.mxu1 (!%p316_p3), %v1251_v5  ;;  %v1259_v13 = vpack.c.bf16 (!%p316_p3), %v518_v12, %v517_v11  ;;  %v520_v22 = vld [vmem:[%s1660_s3 + $0x18] sm:$0xff] (!%p316_p3)  ;;  %v372_v23 = vand.u32 (!%p316_p3), 7, %v366_v16  ;;  %v367_v25 = vadd.s32 (!%p316_p3), 8, %v366_v16  ;;  %vm495_vm5 = vcmp.lt.s32.totalorder (!%p316_p3), %v366_v16, 1  ;;  %v525_v32 = vld [vmem:[%s1660_s3 + $0x40] sm:$0xff] (!%p316_p3)  ;;  %v526_v33 = vld [vmem:[%s1660_s3 + $0x48] sm:$0xff] (!%p316_p3) }
   0xc   : > { %1254 = vmatpush3.bf16.msra.mxu1 (!%p316_p3), %v1251_v5  ;;  %v1263_v29 = vpack.c.bf16 (!%p316_p3), %v520_v22, %v519_v21  ;;  %vm508_vm6 = vcmp.lt.s32.totalorder (!%p316_p3), %v366_v16, 7  ;;  %v1267_v40 = vpack.c.bf16 (!%p316_p3), %v526_v33, %v525_v32  ;;  %v527_v41 = vld [vmem:[%s1660_s3 + $0x50] sm:$0xff] (!%p316_p3)  ;;  %v528_v42 = vld [vmem:[%s1660_s3 + $0x58] sm:$0xff] (!%p316_p3)  ;;  %v1092_v47 = vld [vmem:[%s1661_s4] ss:$0 sm:$0xff] (!%p316_p3) }
   0xd   : > { %1256 = vmatprep.subr.bf16.mxu1 (!%p316_p3), %v1255_v10  ;;  %vm491_vm7 = vcmp.gt.s32.totalorder (!%p316_p3), %v372_v23, 0  ;;  %v379_v34 = vand.u32 (!%p316_p3), 7, %v367_v25  ;;  %vm504_vm9 = vcmp.lt.s32.totalorder (!%p316_p3), %v372_v23, 7  ;;  %v1271_v43 = vpack.c.bf16 (!%p316_p3), %v528_v42, %v527_v41 }
   0xf   : > { %s361_s23 = scalar_select %p360_p4, %s1398_s30, 2  ;;  %vm492_vm8 = vcmp.gt.s32.totalorder %v379_v34, 0  ;;  %vm505_vm10 = vcmp.lt.s32.totalorder %v379_v34, 7 }
  0x10   : > { %s1673_s18 = smov (!%p354_p5, %s1078_s18), 5  ;;  %1258 = vmatpush3.bf16.msra.mxu1 %v1255_v10 }
  0x11   : > { %s1102_s24 = sshll.u32 %s361_s23, 6  ;;  %s1079_s28 = sshll.u32 %s1673_s18, 3  ;;  %1260 = vmatprep.subr.bf16.mxu1 %v1259_v13 }
  0x12   : > { %s1506_s27 = scalar_lea.vmem %s1662_s5, %s1102_s24  ;;  %s357_s15 = scalar_lea.vmem %s1657_s0, %s1079_s28 }
  0x13   : > { %v392_v6 = vld [vmem:[%s357_s15] sm:$0xff]  ;;  %v393_v7 = vld [vmem:[%s357_s15 + $0x8] sm:$0xff] }
  0x14   : > { %1155 = vmatprep.mubr.msk.f32.mxu0 %vm403_vm3, %v392_v6  ;;  %v1409_v6 = vmov (!%p1093_p6), 0.0  }
  0x15   : > { %1156 = vmatmul.mubr.msk.f32.vlgmr.msra.gmra.mrb[0].mxu0 %vm403_vm3, %v393_v7  ;;  %807 = vst [vmem:[#allocation2] sm:$0x3] (!%p1093_p6), %v1409_v6 }
  0xe8   : > { %v1157_v17 = vpop.f32.mrb[0].mxu0 }
  0xe9   : > { %v486_v18 = vadd.f32 %v1157_v17, %v1082_v15  ;;  %v480_v19 = vpop.f32.mrb[1].mxu0 }
  0xea   : > { %v481_v20 = vadd.f32 %v1082_v15, %v480_v19 }
  0xeb   : > { %v490_v24 = vmax.f32 %v486_v18, 0.0 }
  0xec   : > { %v489_v26 = vmax.f32 %v481_v20, 0.0 }
  0xed   : > { %v494_v27 = vrot.slane %v490_v24, 7  ;;  %v507_v28 = vrot.slane %v490_v24, 1 }
  0xee   : > { %v493_v30 = vrot.slane %v489_v26, 7  ;;  %v506_v31 = vrot.slane %v489_v26, 1  ;;  %1166 = vmatprep.mubr.msk.f32.mxu1 %vm529_vm4, %v489_v26 }
  0xef   : > { %1167 = vmatmul.mubr.msk.f32.vlgmr.msra.gmra.mrb[0].mxu1 %vm529_vm4, %v490_v24 }
  0xf0   : > { %1262 = vmatpush3.bf16.msra.mxu1 %v1259_v13  ;;  %v497_v35 = vsel %vm495_vm5, %v494_v27, %v493_v30  ;;  %v496_v36 = vsel %vm495_vm5, %v493_v30, %v494_v27  ;;  %v509_v37 = vsel %vm508_vm6, %v506_v31, %v507_v28  ;;  %v510_v38 = vsel %vm508_vm6, %v507_v28, %v506_v31 }
  0xf1   : > { %1264 = vmatprep.subr.bf16.mxu1 %v1263_v29  ;;  %v502_v39 = vsel %vm491_vm7, %v497_v35, 0.0  ;;  %v503_v44 = vsel %vm492_vm8, %v496_v36, 0.0  ;;  %v515_v45 = vsel %vm504_vm9, %v509_v37, 0.0  ;;  %v516_v46 = vsel %vm505_vm10, %v510_v38, 0.0 }
  0xf2   : > { %1177 = vmatprep.mubr.msk.f32.mxu1 %vm529_vm4, %v502_v39 }
  0xf4   : > { %1266 = vmatpush3.bf16.msra.mxu1 %v1263_v29 }
  0xf5   : > { %1268 = vmatprep.subr.bf16.mxu1 %v1267_v40 }
  0xf7   : > { %1178 = vmatmul.mubr.msk.f32.vlgmr.msra.gmra.mrb[0].mxu1 %vm529_vm4, %v503_v44 }
  0xf8   : > { %1270 = vmatpush3.bf16.msra.mxu1 %v1267_v40  ;;  %1188 = vmatprep.mubr.msk.f32.mxu1 %vm529_vm4, %v515_v45 }
  0xf9   : > { %1272 = vmatprep.subr.bf16.mxu1 %v1271_v43 }
  0xfc   : > { %1274 = vmatpush3.bf16.msra.mxu1 %v1271_v43 }
  0xff   : > { %1189 = vmatmul.mubr.msk.f32.vlgmr.msra.gmra.mrb[0].mxu1 %vm529_vm4, %v516_v46 }
 0x1d2   : > { %v1190_v48 = vpop.f32.mrb[0].mxu1 }
 0x1d3   : > { %v783_v49 = vadd.f32 %v1190_v48, %v1092_v47  ;;  %v764_v50 = vpop.f32.mrb[1].mxu1 }
 0x1d4   : > { %v782_v51 = vadd.f32 %v1092_v47, %v764_v50 }
 0x1d5   : > { %v785_v52 = vmax.f32 %v783_v49, 0.0 }
 0x1d6   : > { %v784_v53 = vmax.f32 %v782_v51, 0.0 }
 0x1d7   : > { %v794_v54 = vsel %vm786_vm11, %v785_v52, 0.0 }
 0x1d8   : > { %v795_v55 = vrot.slane %v794_v54, 4  ;;  %v787_v56 = vsel %vm786_vm11, %v784_v53, 0.0 }
 0x1d9   : > { %v788_v57 = vrot.slane %v787_v56, 4 }
 0x1da   : > { %v796_v58 = vadd.f32 %v795_v55, %v794_v54 }
 0x1db   : > { %v789_v59 = vadd.f32 %v788_v57, %v787_v56 }
 0x1dc   : > { %v797_v60 = vrot.slane %v796_v58, 2 }
 0x1dd   : > { %v790_v61 = vrot.slane %v789_v59, 2 }
 0x1de   : > { %v798_v62 = vadd.f32 %v797_v60, %v796_v58 }
 0x1df   : > { %v791_v63 = vadd.f32 %v790_v61, %v789_v59  ;;  %806 = sbr.rel (%p1093_p6) target bundleno = 486 (0x1e6), region = 60 }
 0x1e0   : > { %v799_v0 = vrot.slane %v798_v62, 1 }
 0x1e1   : > { %v792_v1 = vrot.slane %v791_v63, 1 }
 0x1e2   : > { %v800_v2 = vadd.f32 %v799_v0, %v798_v62 }
 0x1e3   : > { %v793_v3 = vadd.f32 %v792_v1, %v791_v63 }
 0x1e4   : > { %v802_v4 = vmul.f32 0.125, %v800_v2 }
 0x1e5   : > { %v801_v5 = vmul.f32 0.125, %v793_v3 }
 0x1e6 PF: > { %v809_v7 = vld [vmem:[%s1506_s27] sm:$0xff]  ;;  %v810_v8 = vld [vmem:[%s1506_s27 + $0x8] sm:$0xff]  ;;  %v811_v9 = vld [vmem:[%s1506_s27 + $0x10] sm:$0xff]  ;;  %v1410_v10 = vmov 0.0|0.0   ;;  %vm1411_vm12 = vmmov 0   ;;  %v1412_v13 = vmov 0.0  }
 0x1e7   : > { %1275 = vmatprep.subr.bf16.mxu0 %v1410_v10  ;;  %v1276_v11 = vpack.c.bf16 %v810_v8, %v809_v7  ;;  %v812_v12 = vld [vmem:[%s1506_s27 + $0x18] sm:$0xff]  ;;  %1207 = vmatprep.mubr.msk.f32.mxu0 %vm1411_vm12, %v1412_v13  ;;  %v813_v15 = vld [vmem:[%s1506_s27 + $0x20] sm:$0xff]  ;;  %v814_v16 = vld [vmem:[%s1506_s27 + $0x28] sm:$0xff]  ;;  %vm819_vm13 = vcmask 1041409   ;;  %p1095_p7 = scmp.ne.s32.totalorder %s1398_s30, 2 }
 0x1e8   : > { %v1279_v14 = vpack.c.bf16 %v812_v12, %v811_v9  ;;  %v1282_v17 = vpack.c.bf16 %v814_v16, %v813_v15  ;;  %v815_v18 = vld [vmem:[%s1506_s27 + $0x30] sm:$0xff]  ;;  %v816_v19 = vld [vmem:[%s1506_s27 + $0x38] sm:$0xff]  ;;  %v820_v21 = vsel %vm819_vm13, %v802_v4, %v801_v5  ;;  %v808_v22 = vld [vmem:[#allocation2] sm:$0x3]  ;;  %v1413_v29 = vmov (!%p1095_p7), 0.0|0.0  }
 0x1e9   : > { %1277 = vmatpush3.bf16.msra.mxu0 %v1276_v11  ;;  %v1285_v20 = vpack.c.bf16 %v816_v19, %v815_v18  ;;  %v909_v26 = vld [vmem:[%s1664_s7] sm:$0xff] (!%p1095_p7)  ;;  %v910_v27 = vld [vmem:[%s1664_s7 + $0x8] sm:$0xff] (!%p1095_p7)  ;;  %v911_v28 = vld [vmem:[%s1664_s7 + $0x10] sm:$0xff] (!%p1095_p7)  ;;  %vm1414_vm14 = vmmov (!%p1095_p7), 0   ;;  %v1415_v32 = vmov (!%p1095_p7), 0.0  }
 0x1ea   : > { %1278 = vmatprep.subr.bf16.mxu0 %v1410_v10  ;;  %v1288_v30 = vpack.c.bf16 (!%p1095_p7), %v910_v27, %v909_v26  ;;  %v912_v31 = vld [vmem:[%s1664_s7 + $0x18] sm:$0xff] (!%p1095_p7)  ;;  %v913_v34 = vld [vmem:[%s1664_s7 + $0x20] sm:$0xff] (!%p1095_p7)  ;;  %v914_v35 = vld [vmem:[%s1664_s7 + $0x28] sm:$0xff] (!%p1095_p7) }
 0x1eb   : > { %v1291_v33 = vpack.c.bf16 (!%p1095_p7), %v912_v31, %v911_v28  ;;  %v1294_v36 = vpack.c.bf16 (!%p1095_p7), %v914_v35, %v913_v34  ;;  %v915_v37 = vld [vmem:[%s1664_s7 + $0x30] sm:$0xff] (!%p1095_p7)  ;;  %v916_v38 = vld [vmem:[%s1664_s7 + $0x38] sm:$0xff] (!%p1095_p7)  ;;  %v917_v40 = vld [vmem:[%s1664_s7 + $0x40] sm:$0xff] (!%p1095_p7) }
 0x1ec   : > { %v1297_v39 = vpack.c.bf16 (!%p1095_p7), %v916_v38, %v915_v37  ;;  %v918_v41 = vld [vmem:[%s1664_s7 + $0x48] sm:$0xff] (!%p1095_p7)  ;;  %v919_v43 = vld [vmem:[%s1664_s7 + $0x50] sm:$0xff] (!%p1095_p7)  ;;  %v920_v44 = vld [vmem:[%s1664_s7 + $0x58] sm:$0xff] (!%p1095_p7) }
 0x1ed   : > { %1280 = vmatpush3.bf16.msra.mxu0 %v1279_v14  ;;  %v1300_v42 = vpack.c.bf16 (!%p1095_p7), %v918_v41, %v917_v40  ;;  %v1303_v45 = vpack.c.bf16 (!%p1095_p7), %v920_v44, %v919_v43  ;;  %v921_v46 = vld [vmem:[%s1664_s7 + $0x60] sm:$0xff] (!%p1095_p7)  ;;  %v922_v47 = vld [vmem:[%s1664_s7 + $0x68] sm:$0xff] (!%p1095_p7)  ;;  %v923_v51 = vld [vmem:[%s1664_s7 + $0x70] sm:$0xff] (!%p1095_p7) }
 0x1ee   : > { %1281 = vmatprep.subr.bf16.mxu0 %v1410_v10  ;;  %v1306_v48 = vpack.c.bf16 (!%p1095_p7), %v922_v47, %v921_v46  ;;  %v1096_v50 = vld [vmem:[%s1663_s6] ss:$0 sm:$0xff] (!%p1095_p7)  ;;  %v924_v52 = vld [vmem:[%s1664_s7 + $0x78] sm:$0xff] (!%p1095_p7) }
 0x1ef   : > { %v1309_v54 = vpack.c.bf16 (!%p1095_p7), %v924_v52, %v923_v51  ;;  %v1097_v56 = vld [vmem:[%s1665_s8] ss:$0 sm:$0xff] (!%p1095_p7) }
 0x1f1   : > { %1283 = vmatpush3.bf16.msra.mxu0 %v1282_v17 }
 0x1f2   : > { %1284 = vmatprep.subr.bf16.mxu0 %v1410_v10 }
 0x1f5   : > { %1286 = vmatpush3.bf16.msra.mxu0 %v1285_v20 }
 0x1f6   : > { %1287 = vmatprep.subr.bf16.mxu0 (!%p1095_p7), %v1413_v29 }
 0x1f8   : > { %1208 = vmatmul.mubr.msk.f32.vlgmr.msra.gmra.mrb[2].mxu0 %vm786_vm11, %v820_v21 }
 0x1f9   : > { %1242 = vmatprep.mubr.msk.f32.mxu0 (!%p1095_p7), %vm1414_vm14, %v1415_v32  ;;  %1289 = vmatpush3.bf16.msra.mxu0 (!%p1095_p7), %v1288_v30 }
 0x1fa   : > { %1290 = vmatprep.subr.bf16.mxu0 (!%p1095_p7), %v1413_v29 }
 0x1fd   : > { %1292 = vmatpush3.bf16.msra.mxu0 (!%p1095_p7), %v1291_v33 }
 0x1fe   : > { %1293 = vmatprep.subr.bf16.mxu0 (!%p1095_p7), %v1413_v29 }
 0x201   : > { %1295 = vmatpush3.bf16.msra.mxu0 (!%p1095_p7), %v1294_v36 }
 0x202   : > { %1296 = vmatprep.subr.bf16.mxu0 (!%p1095_p7), %v1413_v29 }
 0x205   : > { %1298 = vmatpush3.bf16.msra.mxu0 (!%p1095_p7), %v1297_v39 }
 0x206   : > { %1299 = vmatprep.subr.bf16.mxu0 (!%p1095_p7), %v1413_v29 }
 0x209   : > { %1301 = vmatpush3.bf16.msra.mxu0 (!%p1095_p7), %v1300_v42 }
 0x20a   : > { %1302 = vmatprep.subr.bf16.mxu0 (!%p1095_p7), %v1413_v29 }
 0x20d   : > { %1304 = vmatpush3.bf16.msra.mxu0 (!%p1095_p7), %v1303_v45 }
 0x20e   : > { %1305 = vmatprep.subr.bf16.mxu0 (!%p1095_p7), %v1413_v29 }
 0x211   : > { %1307 = vmatpush3.bf16.msra.mxu0 (!%p1095_p7), %v1306_v48 }
 0x212   : > { %1308 = vmatprep.subr.bf16.mxu0 (!%p1095_p7), %v1413_v29 }
 0x215   : > { %1310 = vmatpush3.bf16.msra.mxu0 (!%p1095_p7), %v1309_v54 }
 0x2c8   : > { %898 = sbr.rel (%p1095_p7) target bundleno = 945 (0x3b1), region = 64 }
 0x2cb   : > { %v889_v23 = vpop.f32.mrb[2].mxu0 }
 0x2cc   : > { %v893_v24 = vadd.f32 %v889_v23, %v808_v22  ;;  %v1209_v25 = vpop.f32.mrb[3].mxu0 }
 0x2ce   : > { %894 = vst [vmem:[#allocation2] sm:$0x3] %v893_v24 }
 0x2d5   : > { %v899_v49 = vld [vmem:[#allocation2] sm:$0x3] }
 0x2d6   : > { %v907_v53 = vadd.f32 %v1096_v50, %v899_v49 }
 0x2d8   : > { %v908_v55 = vmax.f32 %v907_v53, 0.0 }
 0x2da   : > { %1243 = vmatmul.mubr.f32.vlgmr.msra.gmra.mrb[0].mxu0 %v908_v55 }
 0x3ad   : > { %v998_v57 = vpop.f32.mrb[0].mxu0 }
 0x3ae   : > { %v999_v58 = vadd.f32 %v1097_v56, %v998_v57  ;;  %v1244_v59 = vpop.f32.mrb[1].mxu0 }
 0x3b0   : > { %1002 = vst [vmem:[#allocation3] sm:$0x3] %v999_v58 }
 0x3b1 PF: > { %p1622_p8 = scmp.eq.s32.totalorder %s1074_s12, 2  ;;  %s1416_s28 = smov [#allocation3]  }
 0x3b2   : > { %s1012_s29 = sshll.u32 %s1416_s28, 4  ;;  %s1013_s29 = int_to_ptr.vmem [resolvable:$true] %s1012_s29 }
 0x3b3   : > { %s1354_s14 = scalar_lea.vmem %s1013_s29, 32  ;;  %p1361_p12 = scmp.lt.s32.totalorder %s1013_s29, %s1013_s29 }
 0x3b4   : > { %p1355_p9 = scmp.ne.s32.totalorder %s1013_s29, %s1354_s14  ;;  %p1362_p13 = scmp.lt.s32.totalorder %s1354_s14, %s1354_s14 }
 0x3b6   : > { %p1356_p10 = pnand %p1355_p9, %p1622_p8  ;;  %p1363_p0 = por %p1362_p13, %p1361_p12 }
 0x3b8   : > { %p1357_p11 = pneg %p1356_p10 }
 0x3ba   : > { %p1364_p1 = pnand %p1363_p0, %p1357_p11 }
 0x3bc   : > { %1367 = shalt.err (!%p1364_p1)
}
 0x3bd   : > { %s1368_s12 = scalar_lea.hbm %s1666_s9, 32 }
 0x3be   : > { %p1369_p2 = scmp.ne.s32.totalorder %s1666_s9, %s1368_s12  ;;  %p1374_p5 = scmp.lt.u32.totalorder %s1368_s12, %s1666_s9 }
 0x3c0   : > { %p1370_p3 = pnand %p1369_p2, %p1622_p8 }
 0x3c2   : > { %p1371_p4 = pneg %p1370_p3 }
 0x3c4   : > { %p1376_p6 = pnand %p1374_p5, %p1371_p4 }
 0x3c6   : > { %1379 = shalt.err (!%p1376_p6)
}
 0x3c7   : > { %1316 = dma.vmem_to_hbm [thread:$0]  (%p1622_p8), %s1013_s29, 32, %s1666_s9, [#allocation4]  }
 0x3c8   : > { %1393 = dma.done.wait (%p1622_p8), [#allocation4], 32  }
 0x3c9   : > { %1395 = vsyncadd (%p1622_p8), [#allocation4], 4294967264 }
 0x3ca PF: > { %s20_s11 = sadd.s32 1, %s1406_s11   ;;  %s1668_s30 = smov %s1402_s10 }
 0x3cb   : > { %p17_p7 = scmp.ge.s32.totalorder %s20_s11, 5   ;;  %s1669_s10 = smov %s1671_s13 }
 0x3cd   :  { %19 = sbr.rel (!%p17_p7) target bundleno = 2 (0x2), region = 95 }
 0x3d4   :  { %1025 = vsyncpa [#allocation4], 1 }
 0x3d5   :  { %1027 = vsyncpa [#allocation4 + $0x1], 1 }

</bundles_post_ra>
